<compile_context>
chip_gen: v7x
topology: tpu7x:2x2x1
jax: 0.10.0
libtpu: 0.0.40
codegen_flags: <defaults>
</compile_context>

<pallas_src>
import functools
import math

import jax
import jax.numpy as jnp
from jax.experimental import pallas as pl
from jax.experimental.pallas import tpu as pltpu


def _sdpa_dropout_kernel(q_ref, k_ref, v_ref, bits_ref, o_ref, *,
                         keep_threshold, combined_scale):
    q = q_ref[...]      # (BH, Sq, D)
    k = k_ref[...]      # (BH, Sk, D)
    v = v_ref[...]      # (BH, Sk, D)

    # qk[b, i, j] = sum_d q[b, i, d] * k[b, j, d]   (batched matmul, f32 accumulation)
    qk = jnp.einsum("bqd,bkd->bqk", q, k, preferred_element_type=jnp.float32)

    # Inverted dropout decided in integer space; torch's "qk / D**-0.5" (= qk * sqrt(D))
    # and the dropout keep-scale 1/(1-p) are folded into a single constant multiply.
    keep = bits_ref[...] >= jnp.uint32(keep_threshold)
    dropped = jnp.where(keep, qk * jnp.float32(combined_scale), jnp.float32(0.0))

    # output = dropped @ v  -> (BH, Sq, D); feed V in its native dtype to the MXU.
    out = jnp.einsum("bqk,bkd->bqd", dropped.astype(v.dtype), v,
                     preferred_element_type=jnp.float32)
    o_ref[...] = out.astype(o_ref.dtype)


def sdpa_dropout(query, key, value, *, dropout_p=0.5, rng_key=None):
    assert 0.0 <= dropout_p < 1.0
    B, H, Sq, D = query.shape
    Sk = key.shape[2]
    BH = B * H

    q = query.reshape(BH, Sq, D)
    k = key.reshape(BH, Sk, D)
    v = value.reshape(BH, Sk, D)

    if rng_key is None:
        rng_key = jax.random.PRNGKey(0)
    # One dropout-bit tensor for the whole problem (deterministic given rng_key).
    bits = jax.random.bits(rng_key, (BH, Sq, Sk), dtype=jnp.uint32)

    # combined scale = sqrt(D) * 1/(1-p)
    combined_scale = math.sqrt(float(D)) / (1.0 - dropout_p)
    # keep iff bits >= threshold, so P(keep) = 1 - p.
    keep_threshold = min(int(round(dropout_p * float(2 ** 32))), 2 ** 32 - 1)

    kernel = functools.partial(
        _sdpa_dropout_kernel,
        keep_threshold=keep_threshold,
        combined_scale=combined_scale,
    )

    vmem_spec = pl.BlockSpec(memory_space=pltpu.MemorySpace.VMEM)
    out = pl.pallas_call(
        kernel,
        out_shape=jax.ShapeDtypeStruct((BH, Sq, D), query.dtype),
        in_specs=[vmem_spec, vmem_spec, vmem_spec, vmem_spec],
        out_specs=vmem_spec,
    )(q, k, v, bits)

    return out.reshape(B, H, Sq, D)


if __name__ == "__main__":
    root = jax.random.PRNGKey(0)
    kq, kk, kv, kd = jax.random.split(root, 4)

    # Shapes from the module's globals: query (1,4,8,8), key (1,4,16,8), value (1,4,16,8)
    query = jax.random.normal(kq, (1, 4, 8, 8), dtype=jnp.float32)
    key = jax.random.normal(kk, (1, 4, 16, 8), dtype=jnp.float32)
    value = jax.random.normal(kv, (1, 4, 16, 8), dtype=jnp.float32)

    out = sdpa_dropout(query, key, value, dropout_p=0.5, rng_key=kd)
    out = jax.block_until_ready(out)

    assert out.shape == (1, 4, 8, 8), out.shape
    assert bool(jnp.all(jnp.isfinite(out)))
    print("KERNEL_OK")
</pallas_src>

<mosaic_0001>
module attributes {stable_mosaic.version = 11 : i64} {
  func.func @_sdpa_dropout_kernel(%arg0: memref<4x8x8xf32, #tpu.memory_space<vmem>>, %arg1: memref<4x16x8xf32, #tpu.memory_space<vmem>>, %arg2: memref<4x16x8xf32, #tpu.memory_space<vmem>>, %arg3: memref<4x8x16xi32, #tpu.memory_space<vmem>>, %arg4: memref<4x8x8xf32, #tpu.memory_space<vmem>>) attributes {dimension_semantics = [], scalar_prefetch = 0 : i64, scratch_operands = 0 : i64, tpu.core_type = #tpu.core_type<tc>} {
    %c0 = arith.constant 0 : index
    %c0_0 = arith.constant 0 : index
    %c0_1 = arith.constant 0 : index
    %0 = vector.load %arg0[%c0, %c0_0, %c0_1] : memref<4x8x8xf32, #tpu.memory_space<vmem>>, vector<4x8x8xf32>
    %c0_2 = arith.constant 0 : index
    %c0_3 = arith.constant 0 : index
    %c0_4 = arith.constant 0 : index
    %1 = vector.load %arg1[%c0_2, %c0_3, %c0_4] : memref<4x16x8xf32, #tpu.memory_space<vmem>>, vector<4x16x8xf32>
    %c0_5 = arith.constant 0 : index
    %c0_6 = arith.constant 0 : index
    %c0_7 = arith.constant 0 : index
    %2 = vector.load %arg2[%c0_5, %c0_6, %c0_7] : memref<4x16x8xf32, #tpu.memory_space<vmem>>, vector<4x16x8xf32>
    "tpu.trace_start"() <{level = 10 : i32, message = "bqd,bkd->bqk"}> : () -> ()
    %cst = arith.constant dense<0.000000e+00> : vector<4x8x16xf32>
    %3 = tpu.matmul %0, %1, %cst {dimension_numbers = #tpu.dot_dimension_numbers<[2], [2], [1], [1], [0, 0, 0, 1, 1, 1], [0], [0]>} : vector<4x8x8xf32>, vector<4x16x8xf32>, vector<4x8x16xf32> -> vector<4x8x16xf32>
    "tpu.trace_stop"() : () -> ()
    %c0_8 = arith.constant 0 : index
    %c0_9 = arith.constant 0 : index
    %c0_10 = arith.constant 0 : index
    %4 = vector.load %arg3[%c0_8, %c0_9, %c0_10] : memref<4x8x16xi32, #tpu.memory_space<vmem>>, vector<4x8x16xi32>
    %c-2147483648_i32 = arith.constant -2147483648 : i32
    %5 = vector.broadcast %c-2147483648_i32 : i32 to vector<4x8x16xi32>
    %6 = arith.cmpi uge, %4, %5 : vector<4x8x16xi32>
    %cst_11 = arith.constant 5.65685415 : f32
    %7 = vector.broadcast %cst_11 : f32 to vector<4x8x16xf32>
    %8 = arith.mulf %3, %7 : vector<4x8x16xf32>
    %cst_12 = arith.constant 0.000000e+00 : f32
    %9 = vector.broadcast %cst_12 : f32 to vector<4x8x16xf32>
    %10 = arith.select %6, %8, %9 : vector<4x8x16xi1>, vector<4x8x16xf32>
    "tpu.trace_start"() <{level = 10 : i32, message = "bqk,bkd->bqd"}> : () -> ()
    %cst_13 = arith.constant dense<0.000000e+00> : vector<4x8x8xf32>
    %11 = tpu.matmul %10, %2, %cst_13 {dimension_numbers = #tpu.dot_dimension_numbers<[2], [1], [1], [2], [0, 0, 0, 1, 1, 2], [0], [0]>} : vector<4x8x16xf32>, vector<4x16x8xf32>, vector<4x8x8xf32> -> vector<4x8x8xf32>
    "tpu.trace_stop"() : () -> ()
    %c0_14 = arith.constant 0 : index
    %c0_15 = arith.constant 0 : index
    %c0_16 = arith.constant 0 : index
    %12 = vector.load %arg4[%c0_14, %c0_15, %c0_16] : memref<4x8x8xf32, #tpu.memory_space<vmem>>, vector<4x8x8xf32>
    tpu.vector_store %arg4[%c0_14, %c0_15, %c0_16], %11 {strides = array<i32>} : memref<4x8x8xf32, #tpu.memory_space<vmem>>, vector<4x8x8xf32>,
    return
  }
}

</mosaic_0001>

<bundles_post_ra>
// kernel: tpu_custom_call.1
= control target key start
LH: loop header
LB: loop body
LE: loop exit
PB: predicated region body
PF: predicated region fallthrough
CT: control target
= control target key end

     0   :  { %vm38_vm0 = vcmask 64512   ;;  %v838_v3 = vmov 0.0|0.0   ;;  %vm839_vm2 = vmmov 0   ;;  %v840_v8 = vmov 0.0   ;;  %s995_s0 = inlined_call_operand.vmem [shape: f32[4,8,8], index: 0, kind: input, shape index: {}]   ;;  %s996_s1 = inlined_call_operand.vmem [shape: f32[4,16,8], index: 1, kind: input, shape index: {}]   ;;  %s997_s2 = inlined_call_operand.vmem [shape: f32[4,16,8], index: 2, kind: input, shape index: {}]   ;;  %s998_s3 = inlined_call_operand.vmem [shape: u32[4,8,16], index: 3, kind: input, shape index: {}]   ;;  %s999_s4 = inlined_call_operand.hbm [shape: f32[4,8,8], index: 4, kind: output, shape index: {}]  }
   0x1   :  { %v22_v0 = vld [vmem:[%s996_s1] sm:$0xff]  ;;  %v23_v1 = vld [vmem:[%s996_s1 + $0x8] sm:$0xff]  ;;  %v24_v2 = vld [vmem:[%s996_s1 + $0x10] sm:$0xff]  ;;  %780 = vmatprep.subr.bf16.mxu0 %v838_v3  ;;  %784 = vmatprep.subr.bf16.mxu1 %v838_v3 }
   0x2   :  { %v781_v4 = vpack.c.bf16 %v23_v1, %v22_v0  ;;  %vm880_vm1 = vmpackc.low %vm38_vm0, %vm38_vm0  ;;  %v25_v6 = vld [vmem:[%s996_s1 + $0x18] sm:$0xff]  ;;  %728 = vmatprep.mubr.msk.f32.mxu0 %vm839_vm2, %v840_v8  ;;  %735 = vmatprep.mubr.msk.f32.mxu1 %vm839_vm2, %v840_v8  ;;  %v26_v9 = vld [vmem:[%s996_s1 + $0x20] sm:$0xff] }
   0x3   :  { %v785_v7 = vpack.c.bf16 %v25_v6, %v24_v2  ;;  %v27_v10 = vld [vmem:[%s996_s1 + $0x28] sm:$0xff] }
   0x4   :  { %783 = vmatpush3.bf16.xpose.msk.msra.mxu0 %vm880_vm1, %v781_v4 }
   0x5   :  { %787 = vmatpush3.bf16.xpose.msk.msra.mxu1 %vm880_vm1, %v785_v7  ;;  %788 = vmatprep.subr.bf16.mxu0 %v838_v3 }
   0x6   :  { %9 = vsyncpa [#allocation3], 0  ;;  %792 = vmatprep.subr.bf16.mxu1 %v838_v3  ;;  %v28_v11 = vld [vmem:[%s996_s1 + $0x30] sm:$0xff]  ;;  %v29_v12 = vld [vmem:[%s996_s1 + $0x38] sm:$0xff]  ;;  %v789_v14 = vpack.c.bf16 %v27_v10, %v26_v9  ;;  %vm371_vm5 = vcmask 130048  }
   0x7   :  { %v18_v13 = vld [vmem:[%s995_s0] sm:$0xff]  ;;  %v19_v15 = vld [vmem:[%s995_s0 + $0x8] sm:$0xff]  ;;  %v793_v16 = vpack.c.bf16 %v29_v12, %v28_v11  ;;  %v20_v17 = vld [vmem:[%s995_s0 + $0x10] sm:$0xff] }
   0x8   :  { %v21_v18 = vld [vmem:[%s995_s0 + $0x18] sm:$0xff]  ;;  %v30_v19 = vld [vmem:[%s997_s2] sm:$0xff]  ;;  %v31_v20 = vld [vmem:[%s997_s2 + $0x8] sm:$0xff] }
   0x9   :  { %v32_v21 = vld [vmem:[%s997_s2 + $0x10] sm:$0xff]  ;;  %v797_v22 = vpack.c.bf16 %v31_v20, %v30_v19  ;;  %v33_v23 = vld [vmem:[%s997_s2 + $0x18] sm:$0xff]  ;;  %v355_v25 = vld [vmem:[%s998_s3] sm:$0xff] }
   0xa   :  { %v800_v24 = vpack.c.bf16 %v33_v23, %v32_v21  ;;  %v356_v26 = vld [vmem:[%s998_s3 + $0x8] sm:$0xff]  ;;  %v34_v27 = vld [vmem:[%s997_s2 + $0x20] sm:$0xff]  ;;  %v36_v29 = vld [vmem:[%s997_s2 + $0x30] sm:$0xff]  ;;  %vm359_vm3 = vcmp.ge.u32.totalorder %v355_v25, 2147483648 }
   0xb   :  { %729 = vmatmul.mubr.msk.f32.vlgmr.msra.gmra.mrb[0].mxu0 %vm38_vm0, %v18_v13  ;;  %v35_v28 = vld [vmem:[%s997_s2 + $0x28] sm:$0xff]  ;;  %v37_v30 = vld [vmem:[%s997_s2 + $0x38] sm:$0xff]  ;;  %vm360_vm4 = vcmp.ge.u32.totalorder %v356_v26, 2147483648  ;;  %v357_v41 = vld [vmem:[%s998_s3 + $0x10] sm:$0xff] }
   0xc   :  { %736 = vmatmul.mubr.msk.f32.vlgmr.msra.gmra.mrb[0].mxu1 %vm38_vm0, %v19_v15  ;;  %791 = vmatpush3.bf16.xpose.msk.msra.mxu0 %vm880_vm1, %v789_v14  ;;  %v803_v35 = vpack.c.bf16 %v35_v28, %v34_v27  ;;  %v806_v38 = vpack.c.bf16 %v37_v30, %v36_v29  ;;  %v358_v42 = vld [vmem:[%s998_s3 + $0x18] sm:$0xff]  ;;  %vm361_vm6 = vcmp.ge.u32.totalorder %v357_v41, 2147483648  ;;  %s841_s3 = smov [#allocation2]  }
   0xd   :  { %795 = vmatpush3.bf16.xpose.msk.msra.mxu1 %vm880_vm1, %v793_v16  ;;  %742 = vmatprep.mubr.msk.f32.mxu0 %vm839_vm2, %v840_v8  ;;  %vm362_vm7 = vcmp.ge.u32.totalorder %v358_v42, 2147483648  ;;  %s673_s8 = sshll.u32 %s841_s3, 4  ;;  %s674_s8 = int_to_ptr.vmem [resolvable:$true] %s673_s8 }
   0xe   :  { %749 = vmatprep.mubr.msk.f32.mxu1 %vm839_vm2, %v840_v8  ;;  %796 = vmatprep.subr.bf16.mxu0 %v838_v3  ;;  %s814_s1 = scalar_lea.vmem %s674_s8, 512  ;;  %p819_p1 = scmp.lt.s32.totalorder %s674_s8, %s674_s8 }
   0xf   :  { %799 = vmatprep.subr.bf16.mxu1 %v838_v3  ;;  %p815_p0 = scmp.ne.s32.totalorder %s674_s8, %s814_s1  ;;  %p820_p2 = scmp.lt.s32.totalorder %s814_s1, %s814_s1 }
  0x11   :  { %p821_p3 = por %p820_p2, %p819_p1 }
  0x13   :  { %743 = vmatmul.mubr.msk.f32.vlgmr.msra.gmra.mrb[2].mxu0 %vm38_vm0, %v20_v17  ;;  %p822_p4 = pnand %p821_p3, %p815_p0 }
  0x14   :  { %750 = vmatmul.mubr.msk.f32.vlgmr.msra.gmra.mrb[2].mxu1 %vm38_vm0, %v21_v18  ;;  %756 = vmatprep.mubr.msk.f32.mxu0 %vm839_vm2, %v840_v8 }
  0x15   :  { %763 = vmatprep.mubr.msk.f32.mxu1 %vm839_vm2, %v840_v8  ;;  %798 = vmatpush3.bf16.msra.mxu0 %v797_v22 }
  0x16   :  { %801 = vmatpush3.bf16.msra.mxu1 %v800_v24  ;;  %802 = vmatprep.subr.bf16.mxu0 %v838_v3 }
  0x17   :  { %805 = vmatprep.subr.bf16.mxu1 %v838_v3 }
  0xde   :  { %v114_v31 = vpop.f32.mrb[0].mxu0 }
  0xdf   :  { %v363_v32 = vmul.f32 5.656854, %v114_v31  ;;  %v193_v33 = vpop.f32.mrb[0].mxu1  ;;  %v730_v34 = vpop.f32.mrb[1].mxu0 }
  0xe0   :  { %v364_v36 = vmul.f32 5.656854, %v193_v33  ;;  %v737_v37 = vpop.f32.mrb[1].mxu1 }
  0xe1   :  { %v367_v39 = vsel %vm359_vm3, %v363_v32, 0.0 }
  0xe2   :  { %v368_v40 = vsel %vm360_vm4, %v364_v36, 0.0  ;;  %757 = vmatmul.mubr.msk.f32.vlgmr.msra.gmra.mrb[4].mxu0 %vm371_vm5, %v367_v39 }
  0xe3   :  { %764 = vmatmul.mubr.msk.f32.vlgmr.msra.gmra.mrb[4].mxu1 %vm371_vm5, %v368_v40  ;;  %804 = vmatpush3.bf16.msra.mxu0 %v803_v35 }
  0xe4   :  { %807 = vmatpush3.bf16.msra.mxu1 %v806_v38  ;;  %770 = vmatprep.mubr.msk.f32.mxu0 %vm839_vm2, %v840_v8 }
  0xe5   :  { %777 = vmatprep.mubr.msk.f32.mxu1 %vm839_vm2, %v840_v8 }
  0xe6   :  { %v272_v43 = vpop.f32.mrb[2].mxu0 }
  0xe7   :  { %v365_v44 = vmul.f32 5.656854, %v272_v43  ;;  %v351_v45 = vpop.f32.mrb[2].mxu1  ;;  %v744_v46 = vpop.f32.mrb[3].mxu0 }
  0xe8   :  { %v366_v47 = vmul.f32 5.656854, %v351_v45  ;;  %v751_v48 = vpop.f32.mrb[3].mxu1 }
  0xe9   :  { %v369_v49 = vsel %vm361_vm6, %v365_v44, 0.0 }
  0xea   :  { %v370_v50 = vsel %vm362_vm7, %v366_v47, 0.0  ;;  %771 = vmatmul.mubr.msk.f32.vlgmr.msra.gmra.mrb[6].mxu0 %vm371_vm5, %v369_v49 }
  0xeb   :  { %778 = vmatmul.mubr.msk.f32.vlgmr.msra.gmra.mrb[6].mxu1 %vm371_vm5, %v370_v50 }
 0x1b5   :  { %v441_v51 = vpop.f32.mrb[4].mxu0 }
 0x1b6   :  { %664 = vst.msk [vmem:[#allocation2] sm:$0xff] %vm38_vm0, %v441_v51  ;;  %v514_v52 = vpop.f32.mrb[4].mxu1  ;;  %v758_v53 = vpop.f32.mrb[5].mxu0 }
 0x1b7   :  { %665 = vst.msk [vmem:[#allocation2 + $0x8] sm:$0xff] %vm38_vm0, %v514_v52  ;;  %v765_v54 = vpop.f32.mrb[5].mxu1 }
 0x1bd   :  { %v587_v55 = vpop.f32.mrb[6].mxu0 }
 0x1be   :  { %666 = vst.msk [vmem:[#allocation2 + $0x10] sm:$0xff] %vm38_vm0, %v587_v55  ;;  %v660_v56 = vpop.f32.mrb[6].mxu1  ;;  %v772_v57 = vpop.f32.mrb[7].mxu0 }
 0x1bf   :  { %667 = vst.msk [vmem:[#allocation2 + $0x18] sm:$0xff] %vm38_vm0, %v660_v56  ;;  %v779_v58 = vpop.f32.mrb[7].mxu1 }
 0x1c0   :  { %825 = shalt.err (!%p822_p4)
}
 0x1c1   :  { %s826_s11 = scalar_lea.hbm %s999_s4, 512 }
 0x1c2   :  { %p827_p5 = scmp.ne.s32.totalorder %s999_s4, %s826_s11  ;;  %p830_p6 = scmp.lt.u32.totalorder %s826_s11, %s999_s4 }
 0x1c4   :  { %p832_p7 = pnand %p830_p6, %p827_p5 }
 0x1c6   :  { %835 = shalt.err (!%p832_p7)
}
 0x1c7   :  { %s842_s16 = smov 128   ;;  %s843_s0 = smov 8  }
 0x1c8   :  { %679 = dma.vmem_to_hbm [thread:$0]  %s674_s8, 512, %s999_s4, [#allocation3], %s842_s16, %s842_s16, %s843_s0  }
 0x1c9   :  { %836 = dma.done.wait [#allocation3], 512  }
 0x1ca   :  { %837 = vsyncadd [#allocation3], 4294966784 }
 0x1cb   :  { %683 = vsyncpa [#allocation3], 1 }

</bundles_post_ra>
